<compile_context>
chip_gen: v7x
topology: tpu7x:2x2x1
jax: 0.10.0
libtpu: 0.0.40
codegen_flags: <defaults>
</compile_context>

<pallas_src>
import jax
import jax.numpy as jnp
from jax.experimental import pallas as pl
from jax.experimental.pallas import tpu as pltpu

_LANE = 128
_SUBLANE = 8


def _leaky_relu(x, slope=0.01):
    # Same math as nn.LeakyReLU(0.01) for slope in (0, 1): mul + max only.
    return jnp.maximum(x, slope * x)


def _generator_kernel(x_ref,
                      w1_ref, b1_ref,
                      w2_ref, b2_ref,
                      w3_ref, b3_ref,
                      w4_ref, b4_ref,
                      out_ref):
    # Whole MLP fused per batch tile; all operands resident in VMEM.
    # jnp.dot accepts f32 or bf16 inputs; accumulation is forced to f32.
    h = jnp.dot(x_ref[...], w1_ref[...],
                preferred_element_type=jnp.float32) + b1_ref[...]
    h = _leaky_relu(h)

    h = jnp.dot(h, w2_ref[...],
                preferred_element_type=jnp.float32) + b2_ref[...]
    h = _leaky_relu(h)

    h = jnp.dot(h, w3_ref[...],
                preferred_element_type=jnp.float32) + b3_ref[...]
    h = _leaky_relu(h)

    h = jnp.dot(h, w4_ref[...],
                preferred_element_type=jnp.float32) + b4_ref[...]
    out_ref[...] = jnp.tanh(h).astype(out_ref.dtype)


def _round_up(x, m):
    return ((x + m - 1) // m) * m


def generator_forward(noise, params, *, batch_tile=512):
    """noise: [B, n_dim]. params: dict of (w, b) per layer (w: [in, out], b: [1, out])."""
    B, n_dim = noise.shape
    h_dim = params["w1"].shape[1]
    z_dim = params["w4"].shape[1]

    # ---- lane-dense output: pad the last layer's columns to a multiple of 128
    z_pad = _round_up(max(z_dim, _LANE), _LANE)
    w4, b4 = params["w4"], params["b4"]
    if z_pad != z_dim:
        w4 = jnp.pad(w4, ((0, 0), (0, z_pad - z_dim)))
        b4 = jnp.pad(b4, ((0, 0), (0, z_pad - z_dim)))

    # ---- batch tiling: TB multiple of 8 (sublane), capped at batch_tile
    TB = min(batch_tile, _round_up(B, _SUBLANE))
    TB = max(_SUBLANE, (TB // _SUBLANE) * _SUBLANE)
    B_pad = _round_up(B, TB)
    x = noise if B_pad == B else jnp.pad(noise, ((0, B_pad - B), (0, 0)))

    grid = (B_pad // TB,)

    # Weights/biases: constant block index across the grid -> stay VMEM-resident.
    const_spec = lambda arr: pl.BlockSpec(arr.shape, lambda i: (0,) * arr.ndim)

    args = (x,
            params["w1"], params["b1"],
            params["w2"], params["b2"],
            params["w3"], params["b3"],
            w4, b4)

    in_specs = [pl.BlockSpec((TB, n_dim), lambda i: (i, 0))] + \
               [const_spec(a) for a in args[1:]]
    out_specs = pl.BlockSpec((TB, z_pad), lambda i: (i, 0))

    # Advisory cost estimate for XLA's scheduler.
    flops = 2 * B_pad * (n_dim * h_dim + 2 * h_dim * h_dim + h_dim * z_pad)
    weight_bytes = sum(int(a.size) * a.dtype.itemsize for a in args[1:])
    bytes_accessed = (int(x.size) * x.dtype.itemsize
                      + B_pad * z_pad * jnp.dtype(noise.dtype).itemsize
                      + weight_bytes)
    cost = pl.CostEstimate(flops=int(flops),
                           transcendentals=int(B_pad * z_pad),
                           bytes_accessed=int(bytes_accessed))

    out_padded = pl.pallas_call(
        _generator_kernel,
        out_shape=jax.ShapeDtypeStruct((B_pad, z_pad), noise.dtype),
        grid_spec=pltpu.PrefetchScalarGridSpec(
            num_scalar_prefetch=0,
            grid=grid,
            in_specs=in_specs,
            out_specs=out_specs,
        ),
        compiler_params=pltpu.CompilerParams(
            dimension_semantics=("parallel",),
        ),
        cost_estimate=cost,
    )(*args)

    # Strip batch and lane padding outside the kernel.
    return out_padded[:B, :z_dim]


def init_generator_params(key, n_dim, h_dim, z_dim):
    """Deterministic init mimicking nn.Linear's U(-1/sqrt(fan_in), 1/sqrt(fan_in)).
    Weights stored transposed vs. PyTorch: [in_features, out_features]."""
    dims = [(n_dim, h_dim), (h_dim, h_dim), (h_dim, h_dim), (h_dim, z_dim)]
    params = {}
    keys = jax.random.split(key, 2 * len(dims))
    for i, (fan_in, fan_out) in enumerate(dims):
        bound = 1.0 / jnp.sqrt(jnp.float32(fan_in))
        w = jax.random.uniform(keys[2 * i], (fan_in, fan_out),
                               minval=-bound, maxval=bound, dtype=jnp.float32)
        b = jax.random.uniform(keys[2 * i + 1], (1, fan_out),
                               minval=-bound, maxval=bound, dtype=jnp.float32)
        params[f"w{i+1}"] = w
        params[f"b{i+1}"] = b
    return params


def _reference_forward(noise, params):
    h = noise
    for i in range(1, 4):
        h = _leaky_relu(h @ params[f"w{i}"] + params[f"b{i}"])
    return jnp.tanh(h @ params["w4"] + params["b4"])


if __name__ == "__main__":
    key = jax.random.PRNGKey(0)
    k_params, k_noise = jax.random.split(key)

    # Small shapes consistent with the module's forward: noise = [batch, n_dim]
    batch, n_dim, h_dim, z_dim = 8, 16, 32, 16

    params = init_generator_params(k_params, n_dim, h_dim, z_dim)
    noise = jax.random.normal(k_noise, (batch, n_dim), dtype=jnp.float32)

    out = generator_forward(noise, params)
    out = jax.block_until_ready(out)

    # Sanity check against pure-JAX reference of the same math.
    ref = _reference_forward(noise, params)
    assert out.shape == (batch, z_dim)
    assert jnp.allclose(out, ref, atol=1e-5, rtol=1e-5)

    print("KERNEL_OK")
</pallas_src>

<mosaic_0001>
module attributes {stable_mosaic.version = 11 : i64} {
  func.func @_generator_kernel(%arg0: i32, %arg1: memref<8x16xf32, #tpu.memory_space<vmem>>, %arg2: memref<16x32xf32, #tpu.memory_space<vmem>>, %arg3: memref<1x32xf32, #tpu.memory_space<vmem>>, %arg4: memref<32x32xf32, #tpu.memory_space<vmem>>, %arg5: memref<1x32xf32, #tpu.memory_space<vmem>>, %arg6: memref<32x32xf32, #tpu.memory_space<vmem>>, %arg7: memref<1x32xf32, #tpu.memory_space<vmem>>, %arg8: memref<32x128xf32, #tpu.memory_space<vmem>>, %arg9: memref<1x128xf32, #tpu.memory_space<vmem>>, %arg10: memref<8x128xf32, #tpu.memory_space<vmem>>) attributes {dimension_semantics = [#tpu.dimension_semantics<parallel>], iteration_bounds = array<i64: 1>, scalar_prefetch = 0 : i64, scratch_operands = 0 : i64, tpu.core_type = #tpu.core_type<tc>, window_params = [{transform_indices = @transform_0, window_bounds = array<i64: 8, 16>}, {pipeline_mode = #tpu.pipeline_mode<synchronous>, transform_indices = @transform_1, window_bounds = array<i64: 16, 32>}, {pipeline_mode = #tpu.pipeline_mode<synchronous>, transform_indices = @transform_2, window_bounds = array<i64: 1, 32>}, {pipeline_mode = #tpu.pipeline_mode<synchronous>, transform_indices = @transform_3, window_bounds = array<i64: 32, 32>}, {pipeline_mode = #tpu.pipeline_mode<synchronous>, transform_indices = @transform_4, window_bounds = array<i64: 1, 32>}, {pipeline_mode = #tpu.pipeline_mode<synchronous>, transform_indices = @transform_5, window_bounds = array<i64: 32, 32>}, {pipeline_mode = #tpu.pipeline_mode<synchronous>, transform_indices = @transform_6, window_bounds = array<i64: 1, 32>}, {pipeline_mode = #tpu.pipeline_mode<synchronous>, transform_indices = @transform_7, window_bounds = array<i64: 32, 128>}, {pipeline_mode = #tpu.pipeline_mode<synchronous>, transform_indices = @transform_8, window_bounds = array<i64: 1, 128>}, {transform_indices = @transform_9, window_bounds = array<i64: 8, 128>}]} {
    %c0 = arith.constant 0 : index
    %c0_0 = arith.constant 0 : index
    %0 = vector.load %arg1[%c0, %c0_0] : memref<8x16xf32, #tpu.memory_space<vmem>>, vector<8x16xf32>
    %c0_1 = arith.constant 0 : index
    %c0_2 = arith.constant 0 : index
    %1 = vector.load %arg2[%c0_1, %c0_2] : memref<16x32xf32, #tpu.memory_space<vmem>>, vector<16x32xf32>
    %cst = arith.constant dense<0.000000e+00> : vector<8x32xf32>
    %2 = tpu.matmul %0, %1, %cst {dimension_numbers = #tpu.dot_dimension_numbers<[1], [0], [0], [1], [0, 0, 1, 1], [], []>} : vector<8x16xf32>, vector<16x32xf32>, vector<8x32xf32> -> vector<8x32xf32>
    %c0_3 = arith.constant 0 : index
    %c0_4 = arith.constant 0 : index
    %3 = vector.load %arg3[%c0_3, %c0_4] : memref<1x32xf32, #tpu.memory_space<vmem>>, vector<1x32xf32>
    %4 = vector.broadcast %3 : vector<1x32xf32> to vector<8x32xf32>
    %5 = arith.addf %2, %4 : vector<8x32xf32>
    %cst_5 = arith.constant 0.00999999977 : f32
    %6 = vector.broadcast %cst_5 : f32 to vector<8x32xf32>
    %7 = arith.mulf %6, %5 : vector<8x32xf32>
    %8 = arith.maximumf %5, %7 : vector<8x32xf32>
    %c0_6 = arith.constant 0 : index
    %c0_7 = arith.constant 0 : index
    %9 = vector.load %arg4[%c0_6, %c0_7] : memref<32x32xf32, #tpu.memory_space<vmem>>, vector<32x32xf32>
    %cst_8 = arith.constant dense<0.000000e+00> : vector<8x32xf32>
    %10 = tpu.matmul %8, %9, %cst_8 {dimension_numbers = #tpu.dot_dimension_numbers<[1], [0], [0], [1], [0, 0, 1, 1], [], []>} : vector<8x32xf32>, vector<32x32xf32>, vector<8x32xf32> -> vector<8x32xf32>
    %c0_9 = arith.constant 0 : index
    %c0_10 = arith.constant 0 : index
    %11 = vector.load %arg5[%c0_9, %c0_10] : memref<1x32xf32, #tpu.memory_space<vmem>>, vector<1x32xf32>
    %12 = vector.broadcast %11 : vector<1x32xf32> to vector<8x32xf32>
    %13 = arith.addf %10, %12 : vector<8x32xf32>
    %cst_11 = arith.constant 0.00999999977 : f32
    %14 = vector.broadcast %cst_11 : f32 to vector<8x32xf32>
    %15 = arith.mulf %14, %13 : vector<8x32xf32>
    %16 = arith.maximumf %13, %15 : vector<8x32xf32>
    %c0_12 = arith.constant 0 : index
    %c0_13 = arith.constant 0 : index
    %17 = vector.load %arg6[%c0_12, %c0_13] : memref<32x32xf32, #tpu.memory_space<vmem>>, vector<32x32xf32>
    %cst_14 = arith.constant dense<0.000000e+00> : vector<8x32xf32>
    %18 = tpu.matmul %16, %17, %cst_14 {dimension_numbers = #tpu.dot_dimension_numbers<[1], [0], [0], [1], [0, 0, 1, 1], [], []>} : vector<8x32xf32>, vector<32x32xf32>, vector<8x32xf32> -> vector<8x32xf32>
    %c0_15 = arith.constant 0 : index
    %c0_16 = arith.constant 0 : index
    %19 = vector.load %arg7[%c0_15, %c0_16] : memref<1x32xf32, #tpu.memory_space<vmem>>, vector<1x32xf32>
    %20 = vector.broadcast %19 : vector<1x32xf32> to vector<8x32xf32>
    %21 = arith.addf %18, %20 : vector<8x32xf32>
    %cst_17 = arith.constant 0.00999999977 : f32
    %22 = vector.broadcast %cst_17 : f32 to vector<8x32xf32>
    %23 = arith.mulf %22, %21 : vector<8x32xf32>
    %24 = arith.maximumf %21, %23 : vector<8x32xf32>
    %c0_18 = arith.constant 0 : index
    %c0_19 = arith.constant 0 : index
    %25 = vector.load %arg8[%c0_18, %c0_19] : memref<32x128xf32, #tpu.memory_space<vmem>>, vector<32x128xf32>
    %cst_20 = arith.constant dense<0.000000e+00> : vector<8x128xf32>
    %26 = tpu.matmul %24, %25, %cst_20 {dimension_numbers = #tpu.dot_dimension_numbers<[1], [0], [0], [1], [0, 0, 1, 1], [], []>} : vector<8x32xf32>, vector<32x128xf32>, vector<8x128xf32> -> vector<8x128xf32>
    %c0_21 = arith.constant 0 : index
    %c0_22 = arith.constant 0 : index
    %27 = vector.load %arg9[%c0_21, %c0_22] : memref<1x128xf32, #tpu.memory_space<vmem>>, vector<1x128xf32>
    %28 = vector.broadcast %27 : vector<1x128xf32> to vector<8x128xf32>
    %29 = arith.addf %26, %28 : vector<8x128xf32>
    %30 = math.tanh %29 : vector<8x128xf32>
    %c0_23 = arith.constant 0 : index
    %c0_24 = arith.constant 0 : index
    %31 = vector.load %arg10[%c0_23, %c0_24] : memref<8x128xf32, #tpu.memory_space<vmem>>, vector<8x128xf32>
    tpu.vector_store %arg10[%c0_23, %c0_24], %30 {strides = array<i32>} : memref<8x128xf32, #tpu.memory_space<vmem>>, vector<8x128xf32>,
    return
  }
  func.func @transform_0(%arg0: i32) -> (i32, i32) {
    %c0_i32 = arith.constant 0 : i32
    %c0_i32_0 = arith.constant 0 : i32
    return %arg0, %c0_i32 : i32, i32
  }
  func.func @transform_1(%arg0: i32) -> (i32, i32) {
    %c0_i32 = arith.constant 0 : i32
    %c0_i32_0 = arith.constant 0 : i32
    %c0_i32_1 = arith.constant 0 : i32
    return %c0_i32, %c0_i32_0 : i32, i32
  }
  func.func @transform_2(%arg0: i32) -> (i32, i32) {
    %c0_i32 = arith.constant 0 : i32
    %c0_i32_0 = arith.constant 0 : i32
    %c0_i32_1 = arith.constant 0 : i32
    return %c0_i32, %c0_i32_0 : i32, i32
  }
  func.func @transform_3(%arg0: i32) -> (i32, i32) {
    %c0_i32 = arith.constant 0 : i32
    %c0_i32_0 = arith.constant 0 : i32
    %c0_i32_1 = arith.constant 0 : i32
    return %c0_i32, %c0_i32_0 : i32, i32
  }
  func.func @transform_4(%arg0: i32) -> (i32, i32) {
    %c0_i32 = arith.constant 0 : i32
    %c0_i32_0 = arith.constant 0 : i32
    %c0_i32_1 = arith.constant 0 : i32
    return %c0_i32, %c0_i32_0 : i32, i32
  }
  func.func @transform_5(%arg0: i32) -> (i32, i32) {
    %c0_i32 = arith.constant 0 : i32
    %c0_i32_0 = arith.constant 0 : i32
    %c0_i32_1 = arith.constant 0 : i32
    return %c0_i32, %c0_i32_0 : i32, i32
  }
  func.func @transform_6(%arg0: i32) -> (i32, i32) {
    %c0_i32 = arith.constant 0 : i32
    %c0_i32_0 = arith.constant 0 : i32
    %c0_i32_1 = arith.constant 0 : i32
    return %c0_i32, %c0_i32_0 : i32, i32
  }
  func.func @transform_7(%arg0: i32) -> (i32, i32) {
    %c0_i32 = arith.constant 0 : i32
    %c0_i32_0 = arith.constant 0 : i32
    %c0_i32_1 = arith.constant 0 : i32
    return %c0_i32, %c0_i32_0 : i32, i32
  }
  func.func @transform_8(%arg0: i32) -> (i32, i32) {
    %c0_i32 = arith.constant 0 : i32
    %c0_i32_0 = arith.constant 0 : i32
    %c0_i32_1 = arith.constant 0 : i32
    return %c0_i32, %c0_i32_0 : i32, i32
  }
  func.func @transform_9(%arg0: i32) -> (i32, i32) {
    %c0_i32 = arith.constant 0 : i32
    %c0_i32_0 = arith.constant 0 : i32
    return %arg0, %c0_i32 : i32, i32
  }
}

</mosaic_0001>

<bundles_post_ra>
// kernel: tpu_custom_call.1
= control target key start
LH: loop header
LB: loop body
LE: loop exit
PB: predicated region body
PF: predicated region fallthrough
CT: control target
= control target key end

     0   :  { %14 = vsyncpa [#allocation3], 0  ;;  %s865_s0 = inlined_call_operand.hbm [shape: f32[8,16], index: 0, kind: input, shape index: {}]   ;;  %s866_s1 = inlined_call_operand.hbm [shape: f32[16,32], index: 1, kind: input, shape index: {}]   ;;  %s867_s2 = inlined_call_operand.vmem [shape: f32[1,32], index: 2, kind: input, shape index: {}]   ;;  %s868_s3 = inlined_call_operand.hbm [shape: f32[32,32], index: 3, kind: input, shape index: {}]   ;;  %s869_s4 = inlined_call_operand.vmem [shape: f32[1,32], index: 4, kind: input, shape index: {}]   ;;  %s870_s5 = inlined_call_operand.hbm [shape: f32[32,32], index: 5, kind: input, shape index: {}]   ;;  %s871_s6 = inlined_call_operand.vmem [shape: f32[1,32], index: 6, kind: input, shape index: {}]   ;;  %s872_s7 = inlined_call_operand.hbm [shape: f32[32,128], index: 7, kind: input, shape index: {}]   ;;  %s873_s8 = inlined_call_operand.vmem [shape: f32[1,128], index: 8, kind: input, shape index: {}]   ;;  %s874_s9 = inlined_call_operand.hbm [shape: f32[8,128], index: 9, kind: output, shape index: {}]  }
   0x1   :  { %15 = vsyncpa [#allocation6], 0 }
   0x2   :  { %16 = vsyncpa [#allocation9], 0 }
   0x3   :  { %17 = vsyncpa [#allocation4], 0  ;;  %s701_s30 = smov [#allocation5]   ;;  %s561_s13 = scalar_lea.hbm %s866_s1, 256 }
   0x4   :  { %s33_s10 = sshll.u32 %s701_s30, 4  ;;  %p562_p0 = scmp.ne.s32.totalorder %s866_s1, %s561_s13  ;;  %s34_s10 = int_to_ptr.vmem [resolvable:$true] %s33_s10 }
   0x5   :  { %p565_p1 = scmp.lt.u32.totalorder %s561_s13, %s866_s1 }
   0x7   :  { %p567_p2 = pnand %p565_p1, %p562_p0 }
   0x9   :  { %570 = shalt.err (!%p567_p2)
}
   0xa   :  { %s571_s18 = scalar_lea.vmem %s34_s10, 256  ;;  %p576_p4 = scmp.lt.s32.totalorder %s34_s10, %s34_s10 }
   0xb   :  { %p572_p3 = scmp.ne.s32.totalorder %s34_s10, %s571_s18  ;;  %p577_p5 = scmp.lt.s32.totalorder %s571_s18, %s571_s18 }
   0xd   :  { %p578_p6 = por %p577_p5, %p576_p4 }
   0xf   :  { %p579_p7 = pnand %p578_p6, %p572_p3 }
  0x11   :  { %582 = shalt.err (!%p579_p7)
}
  0x12   :  { %s702_s19 = smov 128   ;;  %s703_s20 = smov 8  }
  0x13   :  { %39 = dma.hbm_to_vmem [thread:$0]  %s866_s1, 256, %s34_s10, [#allocation6], %s702_s19, %s702_s19, %s703_s20  }
  0x14   :  { %s704_s23 = smov [#allocation8]   ;;  %s705_s25 = smov [#allocation2]  }
  0x15   :  { %s61_s24 = sshll.u32 %s704_s23, 4  ;;  %s24_s26 = sshll.u32 %s705_s25, 4  ;;  %s62_s24 = int_to_ptr.vmem [resolvable:$true] %s61_s24  ;;  %s25_s26 = int_to_ptr.vmem [resolvable:$true] %s24_s26 }
  0x16   :  { %s583_s29 = scalar_lea.hbm %s870_s5, 512 }
  0x17   :  { %p584_p8 = scmp.ne.s32.totalorder %s870_s5, %s583_s29  ;;  %p587_p9 = scmp.lt.u32.totalorder %s583_s29, %s870_s5 }
  0x19   :  { %p589_p10 = pnand %p587_p9, %p584_p8 }
  0x1b   :  { %592 = shalt.err (!%p589_p10)
}
  0x1c   :  { %s593_s1 = scalar_lea.vmem %s62_s24, 512  ;;  %p598_p12 = scmp.lt.s32.totalorder %s62_s24, %s62_s24 }
  0x1d   :  { %p594_p11 = scmp.ne.s32.totalorder %s62_s24, %s593_s1  ;;  %p599_p13 = scmp.lt.s32.totalorder %s593_s1, %s593_s1 }
  0x1f   :  { %p600_p0 = por %p599_p13, %p598_p12 }
  0x21   :  { %p601_p1 = pnand %p600_p0, %p594_p11 }
  0x23   :  { %604 = shalt.err (!%p601_p1)
}
  0x24   :  { %67 = dma.hbm_to_vmem [thread:$0]  %s870_s5, 512, %s62_s24, [#allocation9], %s702_s19, %s702_s19, %s703_s20  }
  0x25   :  { %s605_s17 = scalar_lea.hbm %s865_s0, 128 }
  0x26   :  { %p606_p2 = scmp.ne.s32.totalorder %s865_s0, %s605_s17  ;;  %p609_p3 = scmp.lt.u32.totalorder %s605_s17, %s865_s0 }
  0x28   :  { %p611_p4 = pnand %p609_p3, %p606_p2 }
  0x2a   :  { %614 = shalt.err (!%p611_p4)
}
  0x2b   :  { %s615_s25 = scalar_lea.vmem %s25_s26, 128  ;;  %p620_p6 = scmp.lt.s32.totalorder %s25_s26, %s25_s26 }
  0x2c   :  { %p616_p5 = scmp.ne.s32.totalorder %s25_s26, %s615_s25  ;;  %p621_p7 = scmp.lt.s32.totalorder %s615_s25, %s615_s25 }
  0x2e   :  { %p622_p8 = por %p621_p7, %p620_p6 }
  0x30   :  { %p623_p9 = pnand %p622_p8, %p616_p5 }
  0x32   :  { %626 = shalt.err (!%p623_p9)
}
  0x33   :  { %27 = dma.hbm_to_vmem [thread:$0]  %s865_s0, 128, %s25_s26, [#allocation3]  }
  0x34   :  { %s706_s27 = smov [#allocation7]   ;;  %s707_s29 = smov [#allocation10]  }
  0x35   :  { %s47_s28 = sshll.u32 %s706_s27, 4  ;;  %s75_s30 = sshll.u32 %s707_s29, 4  ;;  %s48_s28 = int_to_ptr.vmem [resolvable:$true] %s47_s28  ;;  %s76_s30 = int_to_ptr.vmem [resolvable:$true] %s75_s30 }
  0x36   :  { %s627_s13 = scalar_lea.hbm %s868_s3, 512 }
  0x37   :  { %p628_p10 = scmp.ne.s32.totalorder %s868_s3, %s627_s13  ;;  %p631_p11 = scmp.lt.u32.totalorder %s627_s13, %s868_s3 }
  0x39   :  { %p633_p12 = pnand %p631_p11, %p628_p10 }
  0x3b   :  { %636 = shalt.err (!%p633_p12)
}
  0x3c   :  { %s637_s0 = scalar_lea.vmem %s48_s28, 512  ;;  %p642_p0 = scmp.lt.s32.totalorder %s48_s28, %s48_s28 }
  0x3d   :  { %p638_p13 = scmp.ne.s32.totalorder %s48_s28, %s637_s0  ;;  %p643_p1 = scmp.lt.s32.totalorder %s637_s0, %s637_s0 }
  0x3f   :  { %p644_p2 = por %p643_p1, %p642_p0 }
  0x41   :  { %p645_p3 = pnand %p644_p2, %p638_p13 }
  0x43   :  { %648 = shalt.err (!%p645_p3)
}
  0x44   :  { %53 = dma.hbm_to_vmem [thread:$0]  %s868_s3, 512, %s48_s28, [#allocation6], %s702_s19, %s702_s19, %s703_s20  }
  0x45   :  { %s649_s21 = scalar_lea.hbm %s872_s7, 512 }
  0x46   :  { %p650_p4 = scmp.ne.s32.totalorder %s872_s7, %s649_s21  ;;  %p653_p5 = scmp.lt.u32.totalorder %s649_s21, %s872_s7 }
  0x48   :  { %p655_p6 = pnand %p653_p5, %p650_p4 }
  0x4a   :  { %658 = shalt.err (!%p655_p6)
}
  0x4b   :  { %s659_s24 = scalar_lea.vmem %s76_s30, 512  ;;  %p664_p8 = scmp.lt.s32.totalorder %s76_s30, %s76_s30 }
  0x4c   :  { %p660_p7 = scmp.ne.s32.totalorder %s76_s30, %s659_s24  ;;  %p665_p9 = scmp.lt.s32.totalorder %s659_s24, %s659_s24 }
  0x4e   :  { %p666_p10 = por %p665_p9, %p664_p8 }
  0x50   :  { %p667_p11 = pnand %p666_p10, %p660_p7 }
  0x52   :  { %670 = shalt.err (!%p667_p11)
}
  0x53   :  { %81 = dma.hbm_to_vmem [thread:$0]  %s872_s7, 512, %s76_s30, [#allocation9], %s702_s19, %s702_s19, %s703_s20  }
  0x54   :  { %693 = dma.done.wait [#allocation3], 128  }
  0x55   :  { %694 = vsyncadd [#allocation3], 4294967168 }
  0x56   :  { %695 = dma.done.wait [#allocation6], 768  }
  0x57   :  { %696 = vsyncadd [#allocation6], 4294966528 }
  0x58   :  { %697 = dma.done.wait [#allocation9], 1024  }
  0x59   :  { %698 = vsyncadd [#allocation9], 4294966272  ;;  %v708_v0 = vmov 0.0|0.0   ;;  %vm709_vm0 = vmmov 0   ;;  %v710_v1 = vmov 0.0   ;;  %v100_v2 = vld [vmem:[#allocation5] sm:$0xff] }
  0x5a   :  { %527 = vmatprep.subr.bf16.mxu0 %v708_v0  ;;  %491 = vmatprep.mubr.msk.f32.mxu0 %vm709_vm0, %v710_v1  ;;  %v101_v3 = vld [vmem:[#allocation5 + $0x8] sm:$0xff]  ;;  %v99_v5 = vld [vmem:[#allocation2] sm:$0xff]  ;;  %vm109_vm1 = vcmask 130048   ;;  %v185_v6 = vld [vmem:[#allocation7] sm:$0xff]  ;;  %vm196_vm2 = vcmask 261120   ;;  %s711_s11 = smov [#allocation11]  }
  0x5b   :  { %530 = vmatprep.subr.bf16.mxu1 %v708_v0  ;;  %502 = vmatprep.mubr.msk.f32.mxu1 %vm709_vm0, %v710_v1  ;;  %v528_v4 = vpack.c.bf16 %v101_v3, %v100_v2  ;;  %v186_v7 = vld [vmem:[#allocation7 + $0x8] sm:$0xff]  ;;  %v187_v9 = vld [vmem:[#allocation7 + $0x10] sm:$0xff]  ;;  %v188_v10 = vld [vmem:[#allocation7 + $0x18] sm:$0xff]  ;;  %s450_s12 = sshll.u32 %s711_s11, 4  ;;  %s451_s12 = int_to_ptr.vmem [resolvable:$true] %s450_s12 }
  0x5c   :  { %v531_v8 = vpack.c.bf16 %v186_v7, %v185_v6  ;;  %v534_v11 = vpack.c.bf16 %v188_v10, %v187_v9  ;;  %v461_v12 = vld [vmem:[%s867_s2] ss:$0 sm:$0xff]  ;;  %v272_v18 = vld [vmem:[#allocation8] sm:$0xff]  ;;  %v274_v21 = vld [vmem:[#allocation8 + $0x10] sm:$0xff]  ;;  %p676_p13 = scmp.lt.s32.totalorder %s451_s12, %s451_s12 }
  0x5d   :  { %529 = vmatpush3.bf16.msra.mxu0 %v528_v4  ;;  %v273_v19 = vld [vmem:[#allocation8 + $0x8] sm:$0xff]  ;;  %v275_v22 = vld [vmem:[#allocation8 + $0x18] sm:$0xff]  ;;  %v358_v30 = vld [vmem:[#allocation10] sm:$0xff] }
  0x5e   :  { %536 = vmatprep.subr.bf16.mxu0 %v708_v0  ;;  %532 = vmatpush3.bf16.msra.mxu1 %v531_v8  ;;  %v537_v20 = vpack.c.bf16 %v273_v19, %v272_v18  ;;  %v540_v23 = vpack.c.bf16 %v275_v22, %v274_v21  ;;  %v463_v24 = vld [vmem:[%s869_s4] ss:$0 sm:$0xff]  ;;  %v360_v33 = vld [vmem:[#allocation10 + $0x10] sm:$0xff]  ;;  %v361_v34 = vld [vmem:[#allocation10 + $0x18] sm:$0xff] }
  0x5f   :  { %533 = vmatprep.subr.bf16.mxu1 %v708_v0  ;;  %v359_v31 = vld [vmem:[#allocation10 + $0x8] sm:$0xff]  ;;  %v546_v35 = vpack.c.bf16 %v361_v34, %v360_v33 }
  0x60   :  { %492 = vmatmul.mubr.msk.f32.vlgmr.msra.gmra.mrb[0].mxu0 %vm109_vm1, %v99_v5  ;;  %v543_v32 = vpack.c.bf16 %v359_v31, %v358_v30  ;;  %v465_v36 = vld [vmem:[%s871_s6] ss:$0 sm:$0xff]  ;;  %s671_s6 = scalar_lea.vmem %s451_s12, 128 }
  0x61   :  { %513 = vmatprep.mubr.msk.f32.mxu0 %vm709_vm0, %v710_v1  ;;  %538 = vmatpush3.bf16.msra.mxu0 %v537_v20  ;;  %v467_v42 = vld [vmem:[%s873_s8] ss:$0 sm:$0xff]  ;;  %p672_p12 = scmp.ne.s32.totalorder %s451_s12, %s671_s6  ;;  %p677_p0 = scmp.lt.s32.totalorder %s671_s6, %s671_s6 }
  0x62   :  { %535 = vmatpush3.bf16.msra.mxu1 %v534_v11  ;;  %539 = vmatprep.subr.bf16.mxu0 %v708_v0 }
  0x63   :  { %542 = vmatprep.subr.bf16.mxu1 %v708_v0  ;;  %p678_p1 = por %p677_p0, %p676_p13 }
  0x65   :  { %541 = vmatpush3.bf16.msra.mxu0 %v540_v23  ;;  %p679_p2 = pnand %p678_p1, %p672_p12 }
 0x133   :  { %v179_v13 = vpop.f32.mrb[0].mxu0 }
 0x134   :  { %v180_v14 = vadd.f32 %v461_v12, %v179_v13  ;;  %v493_v15 = vpop.f32.mrb[1].mxu0 }
 0x136   :  { %v183_v16 = vmul.f32 0.01, %v180_v14 }
 0x138   :  { %v184_v17 = vmax.f32 %v180_v14, %v183_v16 }
 0x13a   :  { %503 = vmatmul.mubr.msk.f32.vlgmr.msra.gmra.mrb[0].mxu1 %vm196_vm2, %v184_v17 }
 0x13b   :  { %524 = vmatprep.mubr.msk.f32.mxu1 %vm709_vm0, %v710_v1  ;;  %544 = vmatpush3.bf16.msra.mxu1 %v543_v32 }
 0x13c   :  { %545 = vmatprep.subr.bf16.mxu1 %v708_v0 }
 0x13f   :  { %547 = vmatpush3.bf16.msra.mxu1 %v546_v35 }
 0x20d   :  { %v266_v25 = vpop.f32.mrb[0].mxu1 }
 0x20e   :  { %v267_v26 = vadd.f32 %v463_v24, %v266_v25  ;;  %v504_v27 = vpop.f32.mrb[1].mxu1 }
 0x210   :  { %v270_v28 = vmul.f32 0.01, %v267_v26 }
 0x212   :  { %v271_v29 = vmax.f32 %v267_v26, %v270_v28 }
 0x214   :  { %514 = vmatmul.mubr.msk.f32.vlgmr.msra.gmra.mrb[2].mxu0 %vm196_vm2, %v271_v29 }
 0x2e7   :  { %v352_v37 = vpop.f32.mrb[2].mxu0 }
 0x2e8   :  { %v353_v38 = vadd.f32 %v465_v36, %v352_v37  ;;  %v515_v39 = vpop.f32.mrb[3].mxu0 }
 0x2ea   :  { %v356_v40 = vmul.f32 0.01, %v353_v38 }
 0x2ec   :  { %v357_v41 = vmax.f32 %v353_v38, %v356_v40 }
 0x2ee   :  { %525 = vmatmul.mubr.msk.f32.vlgmr.msra.gmra.mrb[2].mxu1 %vm196_vm2, %v357_v41 }
 0x3c1   :  { %v438_v43 = vpop.f32.mrb[2].mxu1 }
 0x3c2   :  { %v439_v44 = vadd.f32 %v467_v42, %v438_v43  ;;  %v526_v45 = vpop.f32.mrb[3].mxu1 }
 0x3c4   :  { %559 = vtanh.f32 %v439_v44 }
 0x3ce   :  { %v560_v46 = vpop.eup %559 }
 0x3cf   :  { %443 = vst [vmem:[#allocation11] sm:$0xff] %v560_v46 }
 0x3d0   :  { %682 = shalt.err (!%p679_p2)
}
 0x3d1   :  { %s683_s8 = scalar_lea.hbm %s874_s9, 128 }
 0x3d2   :  { %p684_p3 = scmp.ne.s32.totalorder %s874_s9, %s683_s8  ;;  %p687_p4 = scmp.lt.u32.totalorder %s683_s8, %s874_s9 }
 0x3d4   :  { %p689_p5 = pnand %p687_p4, %p684_p3 }
 0x3d6   :  { %692 = shalt.err (!%p689_p5)
}
 0x3d7   :  { %453 = dma.vmem_to_hbm [thread:$0]  %s451_s12, 128, %s874_s9, [#allocation4]  }
 0x3d8   :  { %699 = dma.done.wait [#allocation4], 128  }
 0x3d9   :  { %700 = vsyncadd [#allocation4], 4294967168 }
 0x3da   :  { %457 = vsyncpa [#allocation3], 1 }
 0x3db   :  { %458 = vsyncpa [#allocation6], 1 }
 0x3dc   :  { %459 = vsyncpa [#allocation9], 1 }
 0x3dd   :  { %460 = vsyncpa [#allocation4], 1 }

</bundles_post_ra>
